<compile_context>
chip_gen: v6e
topology: v6e:2x2x1
jax: 0.10.0
libtpu: 0.0.40
codegen_flags: <defaults>
</compile_context>

<pallas_src>
import functools

import jax
import jax.numpy as jnp
from jax import lax
from jax.experimental import pallas as pl
from jax.experimental.pallas import tpu as pltpu

_MIB = 1024 * 1024


# ---------------------------------------------------------------------------
# Kernels
# ---------------------------------------------------------------------------
def _mask_ragged_tail(f, *, cd, tk, k, nk):
    """Zero the out-of-bounds columns of the last (ragged) K tile."""
    rem = cd % tk                        # static Python int
    if rem == 0:
        return f
    col = lax.broadcasted_iota(jnp.int32, f.shape, f.ndim - 1)
    limit = jnp.where(k == nk - 1, rem, tk)
    return jnp.where(col < limit, f, jnp.zeros_like(f))


def _gram_kernel(x_ref, o_ref, *, inv_scale, cd, tk, compute_dtype):
    """Batched path: x_ref (at, b, tk) -> o_ref (at, b, b); accumulate in o_ref."""
    k = pl.program_id(1)
    nk = pl.num_programs(1)

    f = x_ref[...]                                       # native dtype tile
    f = _mask_ragged_tail(f, cd=cd, tk=tk, k=k, nk=nk)
    f = f.astype(compute_dtype)                          # in-kernel bf16 cast

    # Batched F @ F^T, contraction on the last dim of BOTH operands: no
    # transpose is materialized; MXU accumulates in f32.
    partial = lax.dot_general(
        f, f,
        dimension_numbers=(((2,), (2,)), ((0,), (0,))),
        preferred_element_type=jnp.float32,
    )

    @pl.when(k == 0)
    def _():
        o_ref[...] = partial

    @pl.when(k > 0)
    def _():
        o_ref[...] += partial

    @pl.when(k == nk - 1)
    def _():
        o_ref[...] = o_ref[...] * inv_scale


def _gram_kernel_flat(x_ref, o_ref, acc_ref, *, inv_scale, cd, tk, at, b,
                      compute_dtype):
    """Small-b path: x_ref (at*b, tk) -> one (at*b, at*b) matmul per step."""
    k = pl.program_id(1)
    nk = pl.num_programs(1)

    @pl.when(k == 0)
    def _():
        acc_ref[...] = jnp.zeros_like(acc_ref)

    f = x_ref[...]                                       # (at*b, tk)
    f = _mask_ragged_tail(f, cd=cd, tk=tk, k=k, nk=nk)
    f = f.astype(compute_dtype)

    acc_ref[...] += lax.dot_general(
        f, f,
        dimension_numbers=(((1,), (1,)), ((), ())),      # (at*b, at*b)
        preferred_element_type=jnp.float32,
    )

    @pl.when(k == nk - 1)
    def _():
        acc = acc_ref[...]
        for i in range(at):                              # static unroll
            blk = lax.slice(acc, (i * b, i * b), ((i + 1) * b, (i + 1) * b))
            o_ref[i] = blk * inv_scale


# ---------------------------------------------------------------------------
# Tile picking
# ---------------------------------------------------------------------------
def _vmem_limit_bytes():
    try:
        info = pltpu.get_tpu_info()
        cap = int(getattr(info, "vmem_capacity_bytes", 0) or 0) or 64 * _MIB
    except Exception:
        cap = 64 * _MIB                  # conservative fallback (v7x per-core)
    # Leave headroom for compiler-internal scratch; never request > 96 MiB.
    return max(16 * _MIB, min(cap - 8 * _MIB, 96 * _MIB))


def _pick_tk(cd, b, elem_bytes, budget):
    """K-tile width: whole axis if it fits, else largest lane-aligned tile."""
    if 2 * b * cd * elem_bytes <= budget // 2:
        return cd                        # single K step (any size: full dim)
    cap = (budget // 2) // (2 * b * elem_bytes)
    cap = max(128, min((cap // 128) * 128, 8192))
    for cand in range(cap, 127, -128):   # prefer a divisor: no ragged tail
        if cd % cand == 0:
            return cand
    return cap                           # ragged tail, masked in-kernel


def _pick_at(a, b, tk, elem_bytes, flatten, sublane, budget):
    """Batch elements per grid step; keeps grid axis 0 >= 2 (v7x megacore)."""
    cap = a if a < 2 else max(1, a // 2)
    for cand in range(cap, 0, -1):
        if a % cand:
            continue
        if flatten and (cand * b > 512 or cand > 64 or (cand * b) % sublane):
            continue
        in_buf = 2 * cand * b * tk * elem_bytes          # double-buffered input
        out_buf = 2 * cand * b * b * 4                   # double-buffered output
        acc = (cand * b) ** 2 * 4 if flatten else 0      # flat f32 accumulator
        if in_buf + out_buf + acc <= budget:
            return cand
    return 1


# ---------------------------------------------------------------------------
# Wrapper
# ---------------------------------------------------------------------------
def gram_matrix(x: jax.Array, *, compute_dtype=jnp.bfloat16,
                tk_cap: int | None = None) -> jax.Array:
    """x: (a, b, c, d) -> (a, b, b) float32, matching torch GramMatrix.

    compute_dtype: MXU feed dtype (bf16 default, f32 accumulation always).
    tk_cap: optional cap on the K-tile width (testing / tuning knob).
    """
    a, b, c, d = x.shape
    cd = c * d
    elem_bytes = jnp.dtype(x.dtype).itemsize
    sublane = 8 if elem_bytes >= 4 else 32 // elem_bytes   # 8 f32 / 16 bf16

    vmem_limit = _vmem_limit_bytes()
    budget = (vmem_limit * 3) // 5       # tile-picking budget inside the limit

    tk = _pick_tk(cd, b, elem_bytes, budget)
    if tk_cap is not None and cd > tk_cap:
        tk = max(128, (tk_cap // 128) * 128)

    flatten = (b < 128) and (a > 1)      # small-b: merge batch into matmul M
    at = _pick_at(a, b, tk, elem_bytes, flatten, sublane, budget)
    if flatten and at == 1:
        flatten = False
        at = _pick_at(a, b, tk, elem_bytes, False, sublane, budget)

    nk = pl.cdiv(cd, tk)
    grid = (a // at, nk)
    inv_scale = 1.0 / float(b * cd)      # original b*c*d, exactly as in torch

    cost = pl.CostEstimate(
        flops=2 * a * b * b * cd,
        transcendentals=0,
        bytes_accessed=a * b * cd * elem_bytes + a * b * b * 4,
    )
    cparams = pltpu.CompilerParams(
        dimension_semantics=("parallel", "arbitrary"),
        vmem_limit_bytes=int(vmem_limit),
    )

    if flatten:
        feats = x.reshape(a * b, cd)     # free reshape, native dtype
        kernel = functools.partial(
            _gram_kernel_flat, inv_scale=inv_scale, cd=cd, tk=tk, at=at, b=b,
            compute_dtype=compute_dtype)
        in_specs = [pl.BlockSpec((at * b, tk), lambda i, k: (i, k))]
        scratch = [pltpu.VMEM((at * b, at * b), jnp.float32)]
    else:
        feats = x.reshape(a, b, cd)      # free reshape, native dtype
        kernel = functools.partial(
            _gram_kernel, inv_scale=inv_scale, cd=cd, tk=tk,
            compute_dtype=compute_dtype)
        in_specs = [pl.BlockSpec((at, b, tk), lambda i, k: (i, 0, k))]
        scratch = []

    return pl.pallas_call(
        kernel,
        out_shape=jax.ShapeDtypeStruct((a, b, b), jnp.float32),
        grid_spec=pltpu.PrefetchScalarGridSpec(
            num_scalar_prefetch=0,
            grid=grid,
            in_specs=in_specs,
            # Output block is fixed across the K axis (accumulator pattern).
            out_specs=pl.BlockSpec((at, b, b), lambda i, k: (i, 0, 0)),
            scratch_shapes=scratch,
        ),
        compiler_params=cparams,
        cost_estimate=cost,
    )(feats)


# ---------------------------------------------------------------------------
# Self-test
# ---------------------------------------------------------------------------
def _reference(x, compute_dtype):
    a, b, c, d = x.shape
    f = x.reshape(a, b, c * d).astype(compute_dtype).astype(jnp.float32)
    g = jnp.einsum("aij,akj->aik", f, f, precision=lax.Precision.HIGHEST)
    return g / (b * c * d)


def _check(name, out, ref, atol, rtol):
    assert out.shape == ref.shape, (name, out.shape, ref.shape)
    if not bool(jnp.allclose(out, ref, atol=atol, rtol=rtol)):
        err = float(jnp.max(jnp.abs(out - ref)))
        raise AssertionError(f"{name}: max abs err {err}")


if __name__ == "__main__":
    key = jax.random.PRNGKey(0)

    # 1) Spec shape (a=2, b=4, c=d=16): batched path, single K step.
    x1 = jax.random.normal(key, (2, 4, 16, 16), dtype=jnp.float32)
    out1 = jax.block_until_ready(gram_matrix(x1))                   # bf16 default
    _check("bf16/batched", out1, _reference(x1, jnp.bfloat16), 1e-4, 1e-3)
    out1f = jax.block_until_ready(gram_matrix(x1, compute_dtype=jnp.float32))
    _check("f32/batched", out1f, _reference(x1, jnp.float32), 1e-5, 1e-4)

    # 2) Small-b flattened path (a=8 -> at=4: one 16x16 matmul per step).
    x2 = jax.random.normal(jax.random.PRNGKey(0), (8, 4, 16, 16), jnp.float32)
    out2 = jax.block_until_ready(gram_matrix(x2))
    _check("bf16/flat", out2, _reference(x2, jnp.bfloat16), 1e-4, 1e-3)

    # 3) Ragged reduction tail (cd=320, tk forced to 128): in-kernel masking
    #    plus multi-step accumulation directly into the output block.
    x3 = jax.random.normal(jax.random.PRNGKey(0), (2, 8, 16, 20), jnp.float32)
    out3 = jax.block_until_ready(gram_matrix(x3, tk_cap=128))
    _check("bf16/ragged", out3, _reference(x3, jnp.bfloat16), 1e-4, 1e-3)

    # 4) Ragged tail + flattened small-b path together.
    x4 = jax.random.normal(jax.random.PRNGKey(0), (8, 4, 16, 20), jnp.float32)
    out4 = jax.block_until_ready(gram_matrix(x4, tk_cap=128))
    _check("bf16/flat+ragged", out4, _reference(x4, jnp.bfloat16), 1e-4, 1e-3)

    print("KERNEL_OK")
</pallas_src>

<mosaic_0001>
module attributes {stable_mosaic.version = 11 : i64} {
  func.func @_gram_kernel(%arg0: i32, %arg1: i32, %arg2: memref<1x4x256xf32, #tpu.memory_space<vmem>>, %arg3: memref<1x4x4xf32, #tpu.memory_space<vmem>>) attributes {dimension_semantics = [#tpu.dimension_semantics<parallel>, #tpu.dimension_semantics<arbitrary>], iteration_bounds = array<i64: 2, 1>, scalar_prefetch = 0 : i64, scratch_operands = 0 : i64, tpu.core_type = #tpu.core_type<tc>, window_params = [{transform_indices = @transform_0, window_bounds = array<i64: 1, 4, 256>}, {transform_indices = @transform_1, window_bounds = array<i64: 1, 4, 4>}]} {
    %c0 = arith.constant 0 : index
    %c0_0 = arith.constant 0 : index
    %c0_1 = arith.constant 0 : index
    %0 = vector.load %arg2[%c0, %c0_0, %c0_1] : memref<1x4x256xf32, #tpu.memory_space<vmem>>, vector<1x4x256xf32>
    %1 = arith.truncf %0 : vector<1x4x256xf32> to vector<1x4x256xbf16>
    %cst = arith.constant dense<0.000000e+00> : vector<1x4x4xf32>
    %2 = tpu.matmul %1, %1, %cst {dimension_numbers = #tpu.dot_dimension_numbers<[2], [2], [1], [1], [0, 0, 0, 1, 1, 1], [0], [0]>} : vector<1x4x256xbf16>, vector<1x4x256xbf16>, vector<1x4x4xf32> -> vector<1x4x4xf32>
    %c0_i32 = arith.constant 0 : i32
    %3 = arith.cmpi eq, %arg1, %c0_i32 : i32
    %4 = arith.extui %3 : i1 to i32
    %c0_i32_2 = arith.constant 0 : i32
    %5 = arith.cmpi ne, %4, %c0_i32_2 : i32
    scf.if %5 {
      %c0_7 = arith.constant 0 : index
      %c0_8 = arith.constant 0 : index
      %c0_9 = arith.constant 0 : index
      %12 = vector.load %arg3[%c0_7, %c0_8, %c0_9] : memref<1x4x4xf32, #tpu.memory_space<vmem>>, vector<1x4x4xf32>
      tpu.vector_store %arg3[%c0_7, %c0_8, %c0_9], %2 {strides = array<i32>} : memref<1x4x4xf32, #tpu.memory_space<vmem>>, vector<1x4x4xf32>,
    } else {
    }
    %c0_i32_3 = arith.constant 0 : i32
    %6 = arith.cmpi sgt, %arg1, %c0_i32_3 : i32
    %7 = arith.extui %6 : i1 to i32
    %c0_i32_4 = arith.constant 0 : i32
    %8 = arith.cmpi ne, %7, %c0_i32_4 : i32
    scf.if %8 {
      %c0_7 = arith.constant 0 : index
      %c0_8 = arith.constant 0 : index
      %c0_9 = arith.constant 0 : index
      %12 = vector.load %arg3[%c0_7, %c0_8, %c0_9] : memref<1x4x4xf32, #tpu.memory_space<vmem>>, vector<1x4x4xf32>
      %13 = arith.addf %12, %2 : vector<1x4x4xf32>
      %c0_10 = arith.constant 0 : index
      %c0_11 = arith.constant 0 : index
      %c0_12 = arith.constant 0 : index
      %14 = vector.load %arg3[%c0_10, %c0_11, %c0_12] : memref<1x4x4xf32, #tpu.memory_space<vmem>>, vector<1x4x4xf32>
      tpu.vector_store %arg3[%c0_10, %c0_11, %c0_12], %13 {strides = array<i32>} : memref<1x4x4xf32, #tpu.memory_space<vmem>>, vector<1x4x4xf32>,
    } else {
    }
    %c0_i32_5 = arith.constant 0 : i32
    %9 = arith.cmpi eq, %arg1, %c0_i32_5 : i32
    %10 = arith.extui %9 : i1 to i32
    %c0_i32_6 = arith.constant 0 : i32
    %11 = arith.cmpi ne, %10, %c0_i32_6 : i32
    scf.if %11 {
      %c0_7 = arith.constant 0 : index
      %c0_8 = arith.constant 0 : index
      %c0_9 = arith.constant 0 : index
      %12 = vector.load %arg3[%c0_7, %c0_8, %c0_9] : memref<1x4x4xf32, #tpu.memory_space<vmem>>, vector<1x4x4xf32>
      %cst_10 = arith.constant 9.765625E-4 : f32
      %13 = vector.broadcast %cst_10 : f32 to vector<1x4x4xf32>
      %14 = arith.mulf %12, %13 : vector<1x4x4xf32>
      %c0_11 = arith.constant 0 : index
      %c0_12 = arith.constant 0 : index
      %c0_13 = arith.constant 0 : index
      %15 = vector.load %arg3[%c0_11, %c0_12, %c0_13] : memref<1x4x4xf32, #tpu.memory_space<vmem>>, vector<1x4x4xf32>
      tpu.vector_store %arg3[%c0_11, %c0_12, %c0_13], %14 {strides = array<i32>} : memref<1x4x4xf32, #tpu.memory_space<vmem>>, vector<1x4x4xf32>,
    } else {
    }
    return
  }
  func.func @transform_0(%arg0: i32, %arg1: i32) -> (i32, i32, i32) {
    %c0_i32 = arith.constant 0 : i32
    %c0_i32_0 = arith.constant 0 : i32
    return %arg0, %c0_i32, %arg1 : i32, i32, i32
  }
  func.func @transform_1(%arg0: i32, %arg1: i32) -> (i32, i32, i32) {
    %c0_i32 = arith.constant 0 : i32
    %c0_i32_0 = arith.constant 0 : i32
    %c0_i32_1 = arith.constant 0 : i32
    return %arg0, %c0_i32, %c0_i32_0 : i32, i32, i32
  }
}

</mosaic_0001>

<bundles_post_ra>
// kernel: tpu_custom_call.1
= control target key start
LH: loop header
LB: loop body
LE: loop exit
PB: predicated region body
PF: predicated region fallthrough
CT: control target
= control target key end

     0   :  { %6 = vsyncpa [#allocation3], 0  ;;  %s648_s0 = inlined_call_operand.hbm [shape: f32[2,4,256], index: 0, kind: input, shape index: {}]   ;;  %s649_s1 = inlined_call_operand.hbm [shape: f32[2,4,4], index: 1, kind: output, shape index: {}]  }
   0x1   :  { %8 = vsyncpa [#allocation3 + $0x1], 0 }
   0x2   :  { %9 = vsyncpa [#allocation4], 0 }
   0x3   :  { %11 = vsyncpa [#allocation4 + $0x1], 0  ;;  %s513_s6 = smov 0   ;;  %s515_s7 = smov 0  }
   0x4   :  { %s517_s8 = smov 0   ;;  %s519_s9 = smov 0  }
   0x5   :  { %s521_s10 = smov 0   ;;  %s523_s11 = smov 0  }
   0x6 LB: > { %s313_s12 = sadd.s32 4294967295, %s499_s11   ;;  %s314_s13 = sadd.s32 4294967294, %s499_s11   ;;  %s499_s11 = sphi %s523_s11, %s17_s11   ;;  %s495_s10 = sphi %s521_s10, %s661_s10   ;;  %s491_s9 = sphi %s519_s9, %s660_s9   ;;  %s487_s8 = sphi %s517_s8, %s659_s8   ;;  %s483_s7 = sphi %s515_s7, %s658_s7   ;;  %s479_s6 = sphi %s513_s6, %s657_s6  }
   0x7   : > { %s29_s14 = sadd.s32 1, %s495_s10  ;;  %s38_s15 = sadd.s32 1, %s487_s8 }
   0x8   : > { %p31_p0 = scmp.ge.s32.totalorder %s29_s14, 2  ;;  %p45_p1 = scmp.ne.s32.totalorder %s487_s8, %s483_s7 }
   0x9   : > { %p46_p2 = scmp.eq.s32.totalorder %s499_s11, 0  ;;  %p51_p3 = scmp.ne.s32.totalorder %s483_s7, %s479_s6 }
   0xa   : > { %s663_s14 = smov (%p31_p0, %s29_s14), 0  ;;  %p52_p5 = scmp.eq.s32.totalorder %s313_s12, 0 }
   0xb   : > { %p554_p4 = por %p46_p2, %p45_p1  ;;  %s33_s17 = ssub.s32 %s495_s10, %s663_s14 }
   0xc   : > { %p75_p6 = scmp.eq.s32.totalorder %s313_s12, 1  ;;  %p36_p7 = scmp.eq.s32.totalorder %s33_s17, 0 }
   0xd   : > { %p560_p8 = por %p52_p5, %p51_p3  ;;  %p81_p10 = scmp.eq.s32.totalorder %s314_s13, 1 }
   0xe   : > { %p564_p9 = por %p75_p6, %p45_p1  ;;  %p340_p13 = scmp.lt.s32.totalorder %s499_s11, 2 }
   0xf   : > { %s569_s20 = scalar_select %p36_p7, %s487_s8, %s38_s15  }
  0x10   : > { %p571_p11 = por %p81_p10, %p51_p3  ;;  %s101_s22 = sand.u32 1, %s487_s8  }
  0x11   : > { %s317_s23 = sshll.u32 %s101_s22, 3  ;;  %s327_s24 = sshll.u32 %s495_s10, 7 }
  0x12   : > { %s653_s21 = scalar_select %p571_p11, 1, 0 }
  0x13   : > { %s113_s27 = scalar_lea.hbm %s648_s0, %s327_s24  ;;  %s105_s28 = scalar_lea.vmem [#allocation2], %s317_s23 }
  0x14   : > { %s115_s29 = sshll.u32 %s105_s28, 4  ;;  %p584_p0 = pnand %p340_p13, %p554_p4  ;;  %s116_s29 = int_to_ptr.vmem [resolvable:$true] %s115_s29 }
  0x15   : > { %p320_p1 = scmp.ge.s32.totalorder %s499_s11, 1  ;;  %p120_p2 = scmp.lt.s32.totalorder %s499_s11, 3 }
  0x16   : > { %s102_s2 = scalar_lea.sflag [#allocation3], %s101_s22  ;;  %p393_p3 = pneg %p584_p0 }
  0x17   : > { %s404_s3 = scalar_lea.vmem %s116_s29, 128  ;;  %s501_s4 = smov [#allocation2]  }
  0x18   : > { %p405_p5 = scmp.ne.s32.totalorder %s116_s29, %s404_s3  ;;  %s409_s5 = sshll.u32 %s501_s4, 4  ;;  %s410_s5 = int_to_ptr.vmem [resolvable:$false] %s409_s5 }
  0x19   : > { %s411_s12 = scalar_lea.vmem %s410_s5, 256  ;;  %p412_p10 = scmp.lt.s32.totalorder %s116_s29, %s410_s5 }
  0x1a   : > { %p407_p6 = pnand %p405_p5, %p393_p3  ;;  %p413_p12 = scmp.lt.s32.totalorder %s411_s12, %s404_s3 }
  0x1c   : > { %p408_p7 = pneg %p407_p6  ;;  %p414_p4 = por %p413_p12, %p412_p10 }
  0x1e   : > { %p415_p13 = pnand %p414_p4, %p408_p7 }
  0x20   : > { %418 = shalt.err (!%p415_p13)
}
  0x21   : > { %335 = dma.hbm_to_vmem [thread:$0]  (!%p584_p0), %s113_s27, 128, %s116_s29, %s102_s2  }
  0x22   : > { %p121_p11 = pnand %p320_p1, %p120_p2 }
  0x23   : > { %s599_s13 = sand.u32 (!%p121_p11), 1, %s483_s7  }
  0x24   : > { %124 = sbr.rel (%p121_p11) target bundleno = 271 (0x10f), region = 24  ;;  %s321_s15 = sshll.u32 (!%p121_p11), %s599_s13, 3 }
  0x25   : > { %s127_s16 = scalar_lea.sflag (!%p121_p11), [#allocation3], %s599_s13  ;;  %s130_s17 = scalar_lea.vmem (!%p121_p11), [#allocation2], %s321_s15 }
  0x29   : > { %470 = dma.done.wait (%p560_p8), %s127_s16, 128  }
  0x2a   : > { %472 = vsyncadd (%p560_p8), %s127_s16, 4294967168  ;;  %v151_v0 = vld [vmem:[%s130_s17] sm:$0xff]  ;;  %s322_s22 = sshll.u32 %s599_s13, 2  ;;  %vm201_vm0 = vcmask 27648   ;;  %s324_s18 = sshll.u32 %s491_s9, 6 }
  0x2b   : > { %v153_v1 = vcombine.high %v151_v0, %v151_v0  ;;  %v155_v2 = vpack.c.bf16 %v151_v0, %v151_v0  ;;  %s148_s23 = scalar_lea.vmem [#allocation5], %s322_s22  ;;  %s230_s27 = scalar_lea.hbm %s649_s1, %s324_s18 }
  0x2c   : > { %s232_s24 = sshll.u32 %s148_s23, 4  ;;  %s219_s28 = scalar_lea.sflag [#allocation4], %s599_s13  ;;  %s233_s24 = int_to_ptr.vmem [resolvable:$true] %s232_s24 }
  0x2d   : > { %v156_v3 = vpack.c.bf16 %v153_v1, %v153_v1  ;;  %s419_s29 = scalar_lea.vmem %s233_s24, 64  ;;  %s502_s30 = smov [#allocation5]  }
  0x2e   : > { %p420_p8 = scmp.ne.s32.totalorder %s233_s24, %s419_s29  ;;  %s423_s2 = sshll.u32 %s502_s30, 4  ;;  %s424_s2 = int_to_ptr.vmem [resolvable:$false] %s423_s2 }
  0x2f   : > { %171 = vmatprep.subr.bf16.mxu0 %v156_v3  ;;  %189 = vmatprep.mubr.bf16.mxu0 %v156_v3  ;;  %s425_s3 = scalar_lea.vmem %s424_s2, 128  ;;  %p426_p0 = scmp.lt.s32.totalorder %s233_s24, %s424_s2 }
  0x30   : > { %172 = vmatpush1.bf16.xpose.msra.mxu0 %v155_v2  ;;  %p421_p11 = pnand %p420_p8, %p564_p9  ;;  %p427_p1 = scmp.lt.s32.totalorder %s425_s3, %s419_s29 }
  0x32   : > { %p422_p12 = pneg %p421_p11  ;;  %p428_p2 = por %p427_p1, %p426_p0 }
  0x34   : > { %p429_p3 = pnand %p428_p2, %p422_p12 }
  0x37   : > { %190 = vmatmul.mubr.bf16.vlgmr.msra.gmra.mxu0 %v155_v2 }
  0xf7   : > { %v191_v4 = vpop.f32.mrf.mxu0 }
  0xf8   : > { %202 = vst.msk [vmem:[%s148_s23] sm:$0xf] %vm201_vm0, %v191_v4 }
  0xf9   : > { %v193_v5 = vpop.f32.mrf.mxu0 }
  0xfb   : > { %v194_v6 = vpop.f32.mrf.mxu0 }
  0xfd   : > { %v195_v7 = vpop.f32.mrf.mxu0 }
  0xff   : > { %v214_v8 = vld [vmem:[%s148_s23] sm:$0xf] }
 0x100   : > { %v215_v9 = vmul.f32 0.0009765625, %v214_v8 }
 0x102   : > { %217 = vst.msk [vmem:[%s148_s23] sm:$0xf] %vm201_vm0, %v215_v9 }
 0x103   : > { %432 = shalt.err (!%p429_p3)
}
 0x104   : > { %s433_s9 = scalar_lea.hbm %s230_s27, 64  ;;  %s437_s12 = scalar_lea.hbm %s649_s1, 128 }
 0x105   : > { %p434_p5 = scmp.ne.s32.totalorder %s230_s27, %s433_s9  ;;  %p438_p10 = scmp.lt.s32.totalorder %s230_s27, %s649_s1 }
 0x106   : > { %p439_p4 = scmp.lt.s32.totalorder %s437_s12, %s433_s9 }
 0x107   : > { %p435_p6 = pnand %p434_p5, %p564_p9 }
 0x108   : > { %p440_p13 = por %p439_p4, %p438_p10 }
 0x109   : > { %p436_p7 = pneg %p435_p6 }
 0x10b   : > { %p441_p8 = pnand %p440_p13, %p436_p7 }
 0x10d   : > { %444 = shalt.err (!%p441_p8)
}
 0x10e   : > { %330 = dma.vmem_to_hbm [thread:$0]  (%p564_p9), %s233_s24, 64, %s230_s27, %s219_s28  }
 0x10f PF: > { %s244_s16 = sand.u32 1, %s479_s6   ;;  %p655_p11 = scmp.ne.s32.totalorder %s653_s21, 0 }
 0x110   : > { %p656_p12 = scmp.ge.s32.totalorder %s499_s11, 2  ;;  %s245_s17 = scalar_lea.sflag [#allocation4], %s244_s16 }
 0x112   : > { %p337_p0 = pnand %p656_p12, %p655_p11 }
 0x114   : > { %p338_p1 = pneg %p337_p0 }
 0x116   : > { %474 = dma.done.wait (%p338_p1), %s245_s17, 64  }
 0x117   : > { %476 = vsyncadd (%p338_p1), %s245_s17, 4294967232  ;;  %s17_s11 = sadd.s32 1, %s499_s11   ;;  %s657_s6 = smov %s483_s7 }
 0x118   : > { %p14_p2 = scmp.ge.s32.totalorder %s17_s11, 4   ;;  %s658_s7 = smov %s487_s8 }
 0x119   : > { %s659_s8 = smov %s569_s20  ;;  %s660_s9 = smov %s495_s10 }
 0x11a   : > { %s661_s10 = smov %s663_s14  ;;  %16 = sbr.rel (!%p14_p2) target bundleno = 6 (0x6), region = 81 }
 0x11f   :  { %250 = vsyncpa [#allocation3], 1 }
 0x120   :  { %252 = vsyncpa [#allocation3 + $0x1], 1 }
 0x121   :  { %253 = vsyncpa [#allocation4], 1 }
 0x122   :  { %255 = vsyncpa [#allocation4 + $0x1], 1 }

</bundles_post_ra>
